<compile_context>
chip_gen: v7x
topology: tpu7x:2x2x1
jax: 0.10.0
libtpu: 0.0.40
codegen_flags: <defaults>
</compile_context>

<pallas_src>
import functools

import jax
import jax.numpy as jnp
from jax.experimental import pallas as pl
from jax.experimental.pallas import tpu as pltpu


def _round_up(n, m):
    return ((n + m - 1) // m) * m


def _choose_block_lanes(b_pad):
    """Largest multiple of 128 dividing b_pad, capped at 512 lanes per block."""
    if b_pad <= 512:
        return b_pad
    for cand in (512, 384, 256, 128):
        if b_pad % cand == 0:
            return cand
    return 128


def _surrogate_kernel(x_ref, m_ref, a_ref, out_ref, *, t, d):
    """One block of Bt Surrogate instances (batch on lanes).

    x_ref   : (T, D, Bt) f32  -- l_ri, instance b on lane b
    m_ref   : (T, 1, Bt) f32  -- mask
    a_ref   : (T, 1)     f32  -- raw alpha parameter (softmax done in-kernel)
    out_ref : (1, Bt)    f32  -- lane-dense result, one value per instance
    """
    bt = out_ref.shape[-1]

    # Shared alpha softmax, computed once per block (hoisted out of the
    # per-instance work).  Exact reciprocal keeps 1e-5 agreement with the ref.
    a = a_ref[...]                                                  # (T, 1)
    ea = jnp.exp(a - jnp.max(a))
    inv_den = pl.reciprocal(jnp.sum(ea, keepdims=True), approx=False)  # (1, 1)
    alpha_sm = ea * inv_den                                         # (T, 1)

    # Pass 1: per-instance max over masked-in rows.  Only a row-level (1, Bt)
    # select is used -- no full (T, D, Bt) mask tile.
    gmax = jnp.full((1, bt), -jnp.inf, dtype=jnp.float32)
    for i in range(t):
        rmax = jnp.max(x_ref[i], axis=0, keepdims=True)             # (1, Bt)
        gmax = jnp.maximum(gmax, jnp.where(m_ref[i] != 0.0, rmax, -jnp.inf))

    # Pass 2: alpha-weighted exp-sum over rows, row mask folded into the weight.
    s = jnp.zeros((d, bt), dtype=jnp.float32)
    k = jnp.zeros((1, bt), dtype=jnp.float32)
    for i in range(t):
        row_in = (m_ref[i] != 0.0).astype(jnp.float32)              # (1, Bt)
        w_i = alpha_sm[i, 0] * row_in                               # (1, Bt)
        s = s + jnp.exp(x_ref[i] - gmax) * w_i                      # (D, Bt)
        k = k + row_in

    # result_b = -(sum_d log s_{d,b} + D * (gmax_b - log k_b)); scalar term
    # added once per instance instead of broadcast over D.
    # TODO(synk): k == 0 (all rows masked out) yields NaN, matching the
    # degenerate behaviour of the PyTorch module (empty torch.stack there).
    log_s_sum = jnp.sum(jnp.log(s), axis=0, keepdims=True)          # (1, Bt)
    out_ref[...] = -(log_s_sum + float(d) * (gmax - jnp.log(k)))


def surrogate_forward_batched(l_ri, mask, alpha):
    """Batched Surrogate forward.

    l_ri: (B, T, D), mask: (B, T), alpha: (T,)  ->  (B,) float32
    """
    B, T, D = l_ri.shape

    # Batch on lanes: pad B up to a lane-aligned size and pick lanes-per-block.
    B_pad = _round_up(B, 128)
    bt = _choose_block_lanes(B_pad)
    n_blocks = B_pad // bt

    # Relayout once in the wrapper (read+write of the input, far cheaper than
    # padding the feature axis to 128).
    x = jnp.transpose(l_ri.astype(jnp.float32), (1, 2, 0))          # (T, D, B)
    m = jnp.transpose(mask.astype(jnp.float32), (1, 0))[:, None, :]  # (T, 1, B)
    if B_pad != B:
        # Benign padded instances (mask all-ones, zeros input): finite outputs,
        # sliced off below.
        x = jnp.pad(x, ((0, 0), (0, 0), (0, B_pad - B)))
        m = jnp.pad(m, ((0, 0), (0, 0), (0, B_pad - B)), constant_values=1.0)
    a2 = alpha.reshape(T, 1).astype(jnp.float32)

    out = pl.pallas_call(
        functools.partial(_surrogate_kernel, t=T, d=D),
        out_shape=jax.ShapeDtypeStruct((1, B_pad), jnp.float32),
        grid=(n_blocks,),
        in_specs=[
            pl.BlockSpec((T, D, bt), lambda i: (0, 0, i)),   # l_ri block (Bt instances)
            pl.BlockSpec((T, 1, bt), lambda i: (0, 0, i)),   # mask block
            pl.BlockSpec((T, 1), lambda i: (0, 0)),          # shared alpha
        ],
        # Lane-dense output block, owned per grid step -> safe to parallelize.
        out_specs=pl.BlockSpec((1, bt), lambda i: (0, i)),
        compiler_params=pltpu.CompilerParams(
            dimension_semantics=("parallel",)),
    )(x, m, a2)
    return out[0, :B]


def surrogate_forward(l_ri, mask, alpha):
    """Single-instance forward matching the PyTorch module: returns a scalar f32."""
    return surrogate_forward_batched(l_ri[None], mask[None], alpha)[0]


def surrogate_reference(l_ri, mask, alpha):
    """Pure-JAX reference mirroring the PyTorch loop semantics (single instance)."""
    mb = mask != 0.0
    gmax = jnp.max(jnp.where(mb[:, None], l_ri, -jnp.inf))
    alpha_sm = jax.nn.softmax(alpha)
    e = jnp.exp(l_ri - gmax) * alpha_sm[:, None]
    s = jnp.sum(jnp.where(mb[:, None], e, 0.0), axis=0)
    k = jnp.sum(mb.astype(jnp.float32))
    lpr = gmax + jnp.log(s) - jnp.log(k)
    return -jnp.sum(lpr)


if __name__ == "__main__":
    TYPES = 10   # == `types` in Surrogate.__init__ (len(alpha) == len(l_ri))
    D = 16       # feature dimension of each l_ri[i]
    B = 4        # batch several Surrogate evaluations into one pallas_call

    key = jax.random.PRNGKey(0)
    k_alpha, k_lri, k_mask = jax.random.split(key, 3)

    # deterministic "parameter" (stands in for torch.randn(types))
    alpha = jax.random.normal(k_alpha, (TYPES,), dtype=jnp.float32)

    # deterministic inputs
    l_ri = jax.random.normal(k_lri, (B, TYPES, D), dtype=jnp.float32)
    mask = (jax.random.uniform(k_mask, (B, TYPES)) > 0.3).astype(jnp.float32)
    mask = mask.at[:, 0].set(1.0)   # guarantee at least one unmasked row per instance

    out = jax.block_until_ready(surrogate_forward_batched(l_ri, mask, alpha))

    ref = jnp.stack([surrogate_reference(l_ri[b], mask[b], alpha) for b in range(B)])
    assert jnp.allclose(out, ref, rtol=1e-5, atol=1e-5), (out, ref)

    # single-instance path (exact PyTorch module interface: one (T, D) l_ri, one mask)
    out1 = jax.block_until_ready(surrogate_forward(l_ri[0], mask[0], alpha))
    assert jnp.allclose(out1, ref[0], rtol=1e-5, atol=1e-5), (out1, ref[0])

    print("KERNEL_OK")
</pallas_src>

<mosaic_0001>
module attributes {stable_mosaic.version = 11 : i64} {
  func.func @_surrogate_kernel(%arg0: i32, %arg1: memref<10x16x128xf32, #tpu.memory_space<vmem>>, %arg2: memref<10x1x128xf32, #tpu.memory_space<vmem>>, %arg3: memref<10x1xf32, #tpu.memory_space<vmem>>, %arg4: memref<1x128xf32, #tpu.memory_space<vmem>>) attributes {dimension_semantics = [#tpu.dimension_semantics<parallel>], iteration_bounds = array<i64: 1>, scalar_prefetch = 0 : i64, scratch_operands = 0 : i64, tpu.core_type = #tpu.core_type<tc>, window_params = [{transform_indices = @transform_0, window_bounds = array<i64: 10, 16, 128>}, {transform_indices = @transform_1, window_bounds = array<i64: 10, 1, 128>}, {pipeline_mode = #tpu.pipeline_mode<synchronous>, transform_indices = @transform_2, window_bounds = array<i64: 10, 1>}, {transform_indices = @transform_3, window_bounds = array<i64: 1, 128>}]} {
    %c0 = arith.constant 0 : index
    %c0_0 = arith.constant 0 : index
    %0 = vector.load %arg3[%c0, %c0_0] : memref<10x1xf32, #tpu.memory_space<vmem>>, vector<10x1xf32>
    %1 = vector.shape_cast %0 : vector<10x1xf32> to vector<1x10x1xf32>
    %cst = arith.constant dense<0xFF800000> : vector<1xf32>
    %2 = vector.multi_reduction <maximumf>, %1, %cst [1, 2] : vector<1x10x1xf32> to vector<1xf32>
    %3 = vector.shape_cast %2 : vector<1xf32> to vector<1x1x1xf32>
    %4 = vector.extract %3[0, 0, 0] : f32 from vector<1x1x1xf32>
    %5 = vector.broadcast %4 : f32 to vector<10x1xf32>
    %6 = arith.subf %0, %5 : vector<10x1xf32>
    %7 = math.exp %6 : vector<10x1xf32>
    %8 = vector.shape_cast %7 : vector<10x1xf32> to vector<1x10x1xf32>
    %cst_1 = arith.constant dense<0.000000e+00> : vector<1xf32>
    %9 = vector.multi_reduction <add>, %8, %cst_1 [1, 2] : vector<1x10x1xf32> to vector<1xf32>
    %10 = vector.shape_cast %9 : vector<1xf32> to vector<1x1x1xf32>
    %11 = vector.extract %10[0, 0, 0] : f32 from vector<1x1x1xf32>
    %12 = vector.broadcast %11 : f32 to vector<1x1xf32>
    %13 = tpu.reciprocal %12 : vector<1x1xf32> -> vector<1x1xf32>
    %14 = vector.broadcast %13 : vector<1x1xf32> to vector<10x1xf32>
    %15 = arith.mulf %7, %14 : vector<10x1xf32>
    %cst_2 = arith.constant 0xFF800000 : f32
    %16 = vector.broadcast %cst_2 : f32 to vector<1x128xf32>
    %c0_3 = arith.constant 0 : index
    %c0_4 = arith.constant 0 : index
    %c0_5 = arith.constant 0 : index
    %17 = vector.load %arg1[%c0_3, %c0_4, %c0_5] : memref<10x16x128xf32, #tpu.memory_space<vmem>>, vector<1x16x128xf32>
    %18 = vector.shape_cast %17 : vector<1x16x128xf32> to vector<16x128xf32>
    %cst_6 = arith.constant dense<0xFF800000> : vector<128xf32>
    %19 = vector.multi_reduction <maximumf>, %18, %cst_6 [0] : vector<16x128xf32> to vector<128xf32>
    %20 = vector.shape_cast %19 : vector<128xf32> to vector<1x128xf32>
    %c0_7 = arith.constant 0 : index
    %c0_8 = arith.constant 0 : index
    %c0_9 = arith.constant 0 : index
    %21 = vector.load %arg2[%c0_7, %c0_8, %c0_9] : memref<10x1x128xf32, #tpu.memory_space<vmem>>, vector<1x1x128xf32>
    %22 = vector.shape_cast %21 : vector<1x1x128xf32> to vector<1x128xf32>
    %cst_10 = arith.constant 0.000000e+00 : f32
    %23 = vector.broadcast %cst_10 : f32 to vector<1x128xf32>
    %24 = arith.cmpf one, %22, %23 : vector<1x128xf32>
    %cst_11 = arith.constant 0xFF800000 : f32
    %25 = vector.broadcast %cst_11 : f32 to vector<1x128xf32>
    %26 = arith.select %24, %20, %25 : vector<1x128xi1>, vector<1x128xf32>
    %27 = arith.maximumf %16, %26 : vector<1x128xf32>
    %c1 = arith.constant 1 : index
    %c0_12 = arith.constant 0 : index
    %c0_13 = arith.constant 0 : index
    %28 = vector.load %arg1[%c1, %c0_12, %c0_13] : memref<10x16x128xf32, #tpu.memory_space<vmem>>, vector<1x16x128xf32>
    %29 = vector.shape_cast %28 : vector<1x16x128xf32> to vector<16x128xf32>
    %cst_14 = arith.constant dense<0xFF800000> : vector<128xf32>
    %30 = vector.multi_reduction <maximumf>, %29, %cst_14 [0] : vector<16x128xf32> to vector<128xf32>
    %31 = vector.shape_cast %30 : vector<128xf32> to vector<1x128xf32>
    %c1_15 = arith.constant 1 : index
    %c0_16 = arith.constant 0 : index
    %c0_17 = arith.constant 0 : index
    %32 = vector.load %arg2[%c1_15, %c0_16, %c0_17] : memref<10x1x128xf32, #tpu.memory_space<vmem>>, vector<1x1x128xf32>
    %33 = vector.shape_cast %32 : vector<1x1x128xf32> to vector<1x128xf32>
    %cst_18 = arith.constant 0.000000e+00 : f32
    %34 = vector.broadcast %cst_18 : f32 to vector<1x128xf32>
    %35 = arith.cmpf one, %33, %34 : vector<1x128xf32>
    %cst_19 = arith.constant 0xFF800000 : f32
    %36 = vector.broadcast %cst_19 : f32 to vector<1x128xf32>
    %37 = arith.select %35, %31, %36 : vector<1x128xi1>, vector<1x128xf32>
    %38 = arith.maximumf %27, %37 : vector<1x128xf32>
    %c2 = arith.constant 2 : index
    %c0_20 = arith.constant 0 : index
    %c0_21 = arith.constant 0 : index
    %39 = vector.load %arg1[%c2, %c0_20, %c0_21] : memref<10x16x128xf32, #tpu.memory_space<vmem>>, vector<1x16x128xf32>
    %40 = vector.shape_cast %39 : vector<1x16x128xf32> to vector<16x128xf32>
    %cst_22 = arith.constant dense<0xFF800000> : vector<128xf32>
    %41 = vector.multi_reduction <maximumf>, %40, %cst_22 [0] : vector<16x128xf32> to vector<128xf32>
    %42 = vector.shape_cast %41 : vector<128xf32> to vector<1x128xf32>
    %c2_23 = arith.constant 2 : index
    %c0_24 = arith.constant 0 : index
    %c0_25 = arith.constant 0 : index
    %43 = vector.load %arg2[%c2_23, %c0_24, %c0_25] : memref<10x1x128xf32, #tpu.memory_space<vmem>>, vector<1x1x128xf32>
    %44 = vector.shape_cast %43 : vector<1x1x128xf32> to vector<1x128xf32>
    %cst_26 = arith.constant 0.000000e+00 : f32
    %45 = vector.broadcast %cst_26 : f32 to vector<1x128xf32>
    %46 = arith.cmpf one, %44, %45 : vector<1x128xf32>
    %cst_27 = arith.constant 0xFF800000 : f32
    %47 = vector.broadcast %cst_27 : f32 to vector<1x128xf32>
    %48 = arith.select %46, %42, %47 : vector<1x128xi1>, vector<1x128xf32>
    %49 = arith.maximumf %38, %48 : vector<1x128xf32>
    %c3 = arith.constant 3 : index
    %c0_28 = arith.constant 0 : index
    %c0_29 = arith.constant 0 : index
    %50 = vector.load %arg1[%c3, %c0_28, %c0_29] : memref<10x16x128xf32, #tpu.memory_space<vmem>>, vector<1x16x128xf32>
    %51 = vector.shape_cast %50 : vector<1x16x128xf32> to vector<16x128xf32>
    %cst_30 = arith.constant dense<0xFF800000> : vector<128xf32>
    %52 = vector.multi_reduction <maximumf>, %51, %cst_30 [0] : vector<16x128xf32> to vector<128xf32>
    %53 = vector.shape_cast %52 : vector<128xf32> to vector<1x128xf32>
    %c3_31 = arith.constant 3 : index
    %c0_32 = arith.constant 0 : index
    %c0_33 = arith.constant 0 : index
    %54 = vector.load %arg2[%c3_31, %c0_32, %c0_33] : memref<10x1x128xf32, #tpu.memory_space<vmem>>, vector<1x1x128xf32>
    %55 = vector.shape_cast %54 : vector<1x1x128xf32> to vector<1x128xf32>
    %cst_34 = arith.constant 0.000000e+00 : f32
    %56 = vector.broadcast %cst_34 : f32 to vector<1x128xf32>
    %57 = arith.cmpf one, %55, %56 : vector<1x128xf32>
    %cst_35 = arith.constant 0xFF800000 : f32
    %58 = vector.broadcast %cst_35 : f32 to vector<1x128xf32>
    %59 = arith.select %57, %53, %58 : vector<1x128xi1>, vector<1x128xf32>
    %60 = arith.maximumf %49, %59 : vector<1x128xf32>
    %c4 = arith.constant 4 : index
    %c0_36 = arith.constant 0 : index
    %c0_37 = arith.constant 0 : index
    %61 = vector.load %arg1[%c4, %c0_36, %c0_37] : memref<10x16x128xf32, #tpu.memory_space<vmem>>, vector<1x16x128xf32>
    %62 = vector.shape_cast %61 : vector<1x16x128xf32> to vector<16x128xf32>
    %cst_38 = arith.constant dense<0xFF800000> : vector<128xf32>
    %63 = vector.multi_reduction <maximumf>, %62, %cst_38 [0] : vector<16x128xf32> to vector<128xf32>
    %64 = vector.shape_cast %63 : vector<128xf32> to vector<1x128xf32>
    %c4_39 = arith.constant 4 : index
    %c0_40 = arith.constant 0 : index
    %c0_41 = arith.constant 0 : index
    %65 = vector.load %arg2[%c4_39, %c0_40, %c0_41] : memref<10x1x128xf32, #tpu.memory_space<vmem>>, vector<1x1x128xf32>
    %66 = vector.shape_cast %65 : vector<1x1x128xf32> to vector<1x128xf32>
    %cst_42 = arith.constant 0.000000e+00 : f32
    %67 = vector.broadcast %cst_42 : f32 to vector<1x128xf32>
    %68 = arith.cmpf one, %66, %67 : vector<1x128xf32>
    %cst_43 = arith.constant 0xFF800000 : f32
    %69 = vector.broadcast %cst_43 : f32 to vector<1x128xf32>
    %70 = arith.select %68, %64, %69 : vector<1x128xi1>, vector<1x128xf32>
    %71 = arith.maximumf %60, %70 : vector<1x128xf32>
    %c5 = arith.constant 5 : index
    %c0_44 = arith.constant 0 : index
    %c0_45 = arith.constant 0 : index
    %72 = vector.load %arg1[%c5, %c0_44, %c0_45] : memref<10x16x128xf32, #tpu.memory_space<vmem>>, vector<1x16x128xf32>
    %73 = vector.shape_cast %72 : vector<1x16x128xf32> to vector<16x128xf32>
    %cst_46 = arith.constant dense<0xFF800000> : vector<128xf32>
    %74 = vector.multi_reduction <maximumf>, %73, %cst_46 [0] : vector<16x128xf32> to vector<128xf32>
    %75 = vector.shape_cast %74 : vector<128xf32> to vector<1x128xf32>
    %c5_47 = arith.constant 5 : index
    %c0_48 = arith.constant 0 : index
    %c0_49 = arith.constant 0 : index
    %76 = vector.load %arg2[%c5_47, %c0_48, %c0_49] : memref<10x1x128xf32, #tpu.memory_space<vmem>>, vector<1x1x128xf32>
    %77 = vector.shape_cast %76 : vector<1x1x128xf32> to vector<1x128xf32>
    %cst_50 = arith.constant 0.000000e+00 : f32
    %78 = vector.broadcast %cst_50 : f32 to vector<1x128xf32>
    %79 = arith.cmpf one, %77, %78 : vector<1x128xf32>
    %cst_51 = arith.constant 0xFF800000 : f32
    %80 = vector.broadcast %cst_51 : f32 to vector<1x128xf32>
    %81 = arith.select %79, %75, %80 : vector<1x128xi1>, vector<1x128xf32>
    %82 = arith.maximumf %71, %81 : vector<1x128xf32>
    %c6 = arith.constant 6 : index
    %c0_52 = arith.constant 0 : index
    %c0_53 = arith.constant 0 : index
    %83 = vector.load %arg1[%c6, %c0_52, %c0_53] : memref<10x16x128xf32, #tpu.memory_space<vmem>>, vector<1x16x128xf32>
    %84 = vector.shape_cast %83 : vector<1x16x128xf32> to vector<16x128xf32>
    %cst_54 = arith.constant dense<0xFF800000> : vector<128xf32>
    %85 = vector.multi_reduction <maximumf>, %84, %cst_54 [0] : vector<16x128xf32> to vector<128xf32>
    %86 = vector.shape_cast %85 : vector<128xf32> to vector<1x128xf32>
    %c6_55 = arith.constant 6 : index
    %c0_56 = arith.constant 0 : index
    %c0_57 = arith.constant 0 : index
    %87 = vector.load %arg2[%c6_55, %c0_56, %c0_57] : memref<10x1x128xf32, #tpu.memory_space<vmem>>, vector<1x1x128xf32>
    %88 = vector.shape_cast %87 : vector<1x1x128xf32> to vector<1x128xf32>
    %cst_58 = arith.constant 0.000000e+00 : f32
    %89 = vector.broadcast %cst_58 : f32 to vector<1x128xf32>
    %90 = arith.cmpf one, %88, %89 : vector<1x128xf32>
    %cst_59 = arith.constant 0xFF800000 : f32
    %91 = vector.broadcast %cst_59 : f32 to vector<1x128xf32>
    %92 = arith.select %90, %86, %91 : vector<1x128xi1>, vector<1x128xf32>
    %93 = arith.maximumf %82, %92 : vector<1x128xf32>
    %c7 = arith.constant 7 : index
    %c0_60 = arith.constant 0 : index
    %c0_61 = arith.constant 0 : index
    %94 = vector.load %arg1[%c7, %c0_60, %c0_61] : memref<10x16x128xf32, #tpu.memory_space<vmem>>, vector<1x16x128xf32>
    %95 = vector.shape_cast %94 : vector<1x16x128xf32> to vector<16x128xf32>
    %cst_62 = arith.constant dense<0xFF800000> : vector<128xf32>
    %96 = vector.multi_reduction <maximumf>, %95, %cst_62 [0] : vector<16x128xf32> to vector<128xf32>
    %97 = vector.shape_cast %96 : vector<128xf32> to vector<1x128xf32>
    %c7_63 = arith.constant 7 : index
    %c0_64 = arith.constant 0 : index
    %c0_65 = arith.constant 0 : index
    %98 = vector.load %arg2[%c7_63, %c0_64, %c0_65] : memref<10x1x128xf32, #tpu.memory_space<vmem>>, vector<1x1x128xf32>
    %99 = vector.shape_cast %98 : vector<1x1x128xf32> to vector<1x128xf32>
    %cst_66 = arith.constant 0.000000e+00 : f32
    %100 = vector.broadcast %cst_66 : f32 to vector<1x128xf32>
    %101 = arith.cmpf one, %99, %100 : vector<1x128xf32>
    %cst_67 = arith.constant 0xFF800000 : f32
    %102 = vector.broadcast %cst_67 : f32 to vector<1x128xf32>
    %103 = arith.select %101, %97, %102 : vector<1x128xi1>, vector<1x128xf32>
    %104 = arith.maximumf %93, %103 : vector<1x128xf32>
    %c8 = arith.constant 8 : index
    %c0_68 = arith.constant 0 : index
    %c0_69 = arith.constant 0 : index
    %105 = vector.load %arg1[%c8, %c0_68, %c0_69] : memref<10x16x128xf32, #tpu.memory_space<vmem>>, vector<1x16x128xf32>
    %106 = vector.shape_cast %105 : vector<1x16x128xf32> to vector<16x128xf32>
    %cst_70 = arith.constant dense<0xFF800000> : vector<128xf32>
    %107 = vector.multi_reduction <maximumf>, %106, %cst_70 [0] : vector<16x128xf32> to vector<128xf32>
    %108 = vector.shape_cast %107 : vector<128xf32> to vector<1x128xf32>
    %c8_71 = arith.constant 8 : index
    %c0_72 = arith.constant 0 : index
    %c0_73 = arith.constant 0 : index
    %109 = vector.load %arg2[%c8_71, %c0_72, %c0_73] : memref<10x1x128xf32, #tpu.memory_space<vmem>>, vector<1x1x128xf32>
    %110 = vector.shape_cast %109 : vector<1x1x128xf32> to vector<1x128xf32>
    %cst_74 = arith.constant 0.000000e+00 : f32
    %111 = vector.broadcast %cst_74 : f32 to vector<1x128xf32>
    %112 = arith.cmpf one, %110, %111 : vector<1x128xf32>
    %cst_75 = arith.constant 0xFF800000 : f32
    %113 = vector.broadcast %cst_75 : f32 to vector<1x128xf32>
    %114 = arith.select %112, %108, %113 : vector<1x128xi1>, vector<1x128xf32>
    %115 = arith.maximumf %104, %114 : vector<1x128xf32>
    %c9 = arith.constant 9 : index
    %c0_76 = arith.constant 0 : index
    %c0_77 = arith.constant 0 : index
    %116 = vector.load %arg1[%c9, %c0_76, %c0_77] : memref<10x16x128xf32, #tpu.memory_space<vmem>>, vector<1x16x128xf32>
    %117 = vector.shape_cast %116 : vector<1x16x128xf32> to vector<16x128xf32>
    %cst_78 = arith.constant dense<0xFF800000> : vector<128xf32>
    %118 = vector.multi_reduction <maximumf>, %117, %cst_78 [0] : vector<16x128xf32> to vector<128xf32>
    %119 = vector.shape_cast %118 : vector<128xf32> to vector<1x128xf32>
    %c9_79 = arith.constant 9 : index
    %c0_80 = arith.constant 0 : index
    %c0_81 = arith.constant 0 : index
    %120 = vector.load %arg2[%c9_79, %c0_80, %c0_81] : memref<10x1x128xf32, #tpu.memory_space<vmem>>, vector<1x1x128xf32>
    %121 = vector.shape_cast %120 : vector<1x1x128xf32> to vector<1x128xf32>
    %cst_82 = arith.constant 0.000000e+00 : f32
    %122 = vector.broadcast %cst_82 : f32 to vector<1x128xf32>
    %123 = arith.cmpf one, %121, %122 : vector<1x128xf32>
    %cst_83 = arith.constant 0xFF800000 : f32
    %124 = vector.broadcast %cst_83 : f32 to vector<1x128xf32>
    %125 = arith.select %123, %119, %124 : vector<1x128xi1>, vector<1x128xf32>
    %126 = arith.maximumf %115, %125 : vector<1x128xf32>
    %cst_84 = arith.constant 0.000000e+00 : f32
    %127 = vector.broadcast %cst_84 : f32 to vector<16x128xf32>
    %cst_85 = arith.constant 0.000000e+00 : f32
    %128 = vector.broadcast %cst_85 : f32 to vector<1x128xf32>
    %c0_86 = arith.constant 0 : index
    %c0_87 = arith.constant 0 : index
    %c0_88 = arith.constant 0 : index
    %129 = vector.load %arg2[%c0_86, %c0_87, %c0_88] : memref<10x1x128xf32, #tpu.memory_space<vmem>>, vector<1x1x128xf32>
    %130 = vector.shape_cast %129 : vector<1x1x128xf32> to vector<1x128xf32>
    %cst_89 = arith.constant 0.000000e+00 : f32
    %131 = vector.broadcast %cst_89 : f32 to vector<1x128xf32>
    %132 = arith.cmpf one, %130, %131 : vector<1x128xf32>
    %133 = arith.extui %132 : vector<1x128xi1> to vector<1x128xi32>
    %134 = arith.sitofp %133 : vector<1x128xi32> to vector<1x128xf32>
    %135 = vector.extract_strided_slice %15 {offsets = [0, 0], sizes = [1, 1], strides = [1, 1]} : vector<10x1xf32> to vector<1x1xf32>
    %136 = vector.extract %135[0, 0] : f32 from vector<1x1xf32>
    %137 = vector.broadcast %136 : f32 to vector<1x128xf32>
    %138 = arith.mulf %137, %134 : vector<1x128xf32>
    %c0_90 = arith.constant 0 : index
    %c0_91 = arith.constant 0 : index
    %c0_92 = arith.constant 0 : index
    %139 = vector.load %arg1[%c0_90, %c0_91, %c0_92] : memref<10x16x128xf32, #tpu.memory_space<vmem>>, vector<1x16x128xf32>
    %140 = vector.shape_cast %139 : vector<1x16x128xf32> to vector<16x128xf32>
    %141 = vector.broadcast %126 : vector<1x128xf32> to vector<16x128xf32>
    %142 = arith.subf %140, %141 : vector<16x128xf32>
    %143 = math.exp %142 : vector<16x128xf32>
    %144 = vector.broadcast %138 : vector<1x128xf32> to vector<16x128xf32>
    %145 = arith.mulf %143, %144 : vector<16x128xf32>
    %146 = arith.addf %127, %145 : vector<16x128xf32>
    %147 = arith.addf %128, %134 : vector<1x128xf32>
    %c1_93 = arith.constant 1 : index
    %c0_94 = arith.constant 0 : index
    %c0_95 = arith.constant 0 : index
    %148 = vector.load %arg2[%c1_93, %c0_94, %c0_95] : memref<10x1x128xf32, #tpu.memory_space<vmem>>, vector<1x1x128xf32>
    %149 = vector.shape_cast %148 : vector<1x1x128xf32> to vector<1x128xf32>
    %cst_96 = arith.constant 0.000000e+00 : f32
    %150 = vector.broadcast %cst_96 : f32 to vector<1x128xf32>
    %151 = arith.cmpf one, %149, %150 : vector<1x128xf32>
    %152 = arith.extui %151 : vector<1x128xi1> to vector<1x128xi32>
    %153 = arith.sitofp %152 : vector<1x128xi32> to vector<1x128xf32>
    %154 = vector.extract_strided_slice %15 {offsets = [1, 0], sizes = [1, 1], strides = [1, 1]} : vector<10x1xf32> to vector<1x1xf32>
    %155 = vector.extract %154[0, 0] : f32 from vector<1x1xf32>
    %156 = vector.broadcast %155 : f32 to vector<1x128xf32>
    %157 = arith.mulf %156, %153 : vector<1x128xf32>
    %c1_97 = arith.constant 1 : index
    %c0_98 = arith.constant 0 : index
    %c0_99 = arith.constant 0 : index
    %158 = vector.load %arg1[%c1_97, %c0_98, %c0_99] : memref<10x16x128xf32, #tpu.memory_space<vmem>>, vector<1x16x128xf32>
    %159 = vector.shape_cast %158 : vector<1x16x128xf32> to vector<16x128xf32>
    %160 = vector.broadcast %126 : vector<1x128xf32> to vector<16x128xf32>
    %161 = arith.subf %159, %160 : vector<16x128xf32>
    %162 = math.exp %161 : vector<16x128xf32>
    %163 = vector.broadcast %157 : vector<1x128xf32> to vector<16x128xf32>
    %164 = arith.mulf %162, %163 : vector<16x128xf32>
    %165 = arith.addf %146, %164 : vector<16x128xf32>
    %166 = arith.addf %147, %153 : vector<1x128xf32>
    %c2_100 = arith.constant 2 : index
    %c0_101 = arith.constant 0 : index
    %c0_102 = arith.constant 0 : index
    %167 = vector.load %arg2[%c2_100, %c0_101, %c0_102] : memref<10x1x128xf32, #tpu.memory_space<vmem>>, vector<1x1x128xf32>
    %168 = vector.shape_cast %167 : vector<1x1x128xf32> to vector<1x128xf32>
    %cst_103 = arith.constant 0.000000e+00 : f32
    %169 = vector.broadcast %cst_103 : f32 to vector<1x128xf32>
    %170 = arith.cmpf one, %168, %169 : vector<1x128xf32>
    %171 = arith.extui %170 : vector<1x128xi1> to vector<1x128xi32>
    %172 = arith.sitofp %171 : vector<1x128xi32> to vector<1x128xf32>
    %173 = vector.extract_strided_slice %15 {offsets = [2, 0], sizes = [1, 1], strides = [1, 1]} : vector<10x1xf32> to vector<1x1xf32>
    %174 = vector.extract %173[0, 0] : f32 from vector<1x1xf32>
    %175 = vector.broadcast %174 : f32 to vector<1x128xf32>
    %176 = arith.mulf %175, %172 : vector<1x128xf32>
    %c2_104 = arith.constant 2 : index
    %c0_105 = arith.constant 0 : index
    %c0_106 = arith.constant 0 : index
    %177 = vector.load %arg1[%c2_104, %c0_105, %c0_106] : memref<10x16x128xf32, #tpu.memory_space<vmem>>, vector<1x16x128xf32>
    %178 = vector.shape_cast %177 : vector<1x16x128xf32> to vector<16x128xf32>
    %179 = vector.broadcast %126 : vector<1x128xf32> to vector<16x128xf32>
    %180 = arith.subf %178, %179 : vector<16x128xf32>
    %181 = math.exp %180 : vector<16x128xf32>
    %182 = vector.broadcast %176 : vector<1x128xf32> to vector<16x128xf32>
    %183 = arith.mulf %181, %182 : vector<16x128xf32>
    %184 = arith.addf %165, %183 : vector<16x128xf32>
    %185 = arith.addf %166, %172 : vector<1x128xf32>
    %c3_107 = arith.constant 3 : index
    %c0_108 = arith.constant 0 : index
    %c0_109 = arith.constant 0 : index
    %186 = vector.load %arg2[%c3_107, %c0_108, %c0_109] : memref<10x1x128xf32, #tpu.memory_space<vmem>>, vector<1x1x128xf32>
    %187 = vector.shape_cast %186 : vector<1x1x128xf32> to vector<1x128xf32>
    %cst_110 = arith.constant 0.000000e+00 : f32
    %188 = vector.broadcast %cst_110 : f32 to vector<1x128xf32>
    %189 = arith.cmpf one, %187, %188 : vector<1x128xf32>
    %190 = arith.extui %189 : vector<1x128xi1> to vector<1x128xi32>
    %191 = arith.sitofp %190 : vector<1x128xi32> to vector<1x128xf32>
    %192 = vector.extract_strided_slice %15 {offsets = [3, 0], sizes = [1, 1], strides = [1, 1]} : vector<10x1xf32> to vector<1x1xf32>
    %193 = vector.extract %192[0, 0] : f32 from vector<1x1xf32>
    %194 = vector.broadcast %193 : f32 to vector<1x128xf32>
    %195 = arith.mulf %194, %191 : vector<1x128xf32>
    %c3_111 = arith.constant 3 : index
    %c0_112 = arith.constant 0 : index
    %c0_113 = arith.constant 0 : index
    %196 = vector.load %arg1[%c3_111, %c0_112, %c0_113] : memref<10x16x128xf32, #tpu.memory_space<vmem>>, vector<1x16x128xf32>
    %197 = vector.shape_cast %196 : vector<1x16x128xf32> to vector<16x128xf32>
    %198 = vector.broadcast %126 : vector<1x128xf32> to vector<16x128xf32>
    %199 = arith.subf %197, %198 : vector<16x128xf32>
    %200 = math.exp %199 : vector<16x128xf32>
    %201 = vector.broadcast %195 : vector<1x128xf32> to vector<16x128xf32>
    %202 = arith.mulf %200, %201 : vector<16x128xf32>
    %203 = arith.addf %184, %202 : vector<16x128xf32>
    %204 = arith.addf %185, %191 : vector<1x128xf32>
    %c4_114 = arith.constant 4 : index
    %c0_115 = arith.constant 0 : index
    %c0_116 = arith.constant 0 : index
    %205 = vector.load %arg2[%c4_114, %c0_115, %c0_116] : memref<10x1x128xf32, #tpu.memory_space<vmem>>, vector<1x1x128xf32>
    %206 = vector.shape_cast %205 : vector<1x1x128xf32> to vector<1x128xf32>
    %cst_117 = arith.constant 0.000000e+00 : f32
    %207 = vector.broadcast %cst_117 : f32 to vector<1x128xf32>
    %208 = arith.cmpf one, %206, %207 : vector<1x128xf32>
    %209 = arith.extui %208 : vector<1x128xi1> to vector<1x128xi32>
    %210 = arith.sitofp %209 : vector<1x128xi32> to vector<1x128xf32>
    %211 = vector.extract_strided_slice %15 {offsets = [4, 0], sizes = [1, 1], strides = [1, 1]} : vector<10x1xf32> to vector<1x1xf32>
    %212 = vector.extract %211[0, 0] : f32 from vector<1x1xf32>
    %213 = vector.broadcast %212 : f32 to vector<1x128xf32>
    %214 = arith.mulf %213, %210 : vector<1x128xf32>
    %c4_118 = arith.constant 4 : index
    %c0_119 = arith.constant 0 : index
    %c0_120 = arith.constant 0 : index
    %215 = vector.load %arg1[%c4_118, %c0_119, %c0_120] : memref<10x16x128xf32, #tpu.memory_space<vmem>>, vector<1x16x128xf32>
    %216 = vector.shape_cast %215 : vector<1x16x128xf32> to vector<16x128xf32>
    %217 = vector.broadcast %126 : vector<1x128xf32> to vector<16x128xf32>
    %218 = arith.subf %216, %217 : vector<16x128xf32>
    %219 = math.exp %218 : vector<16x128xf32>
    %220 = vector.broadcast %214 : vector<1x128xf32> to vector<16x128xf32>
    %221 = arith.mulf %219, %220 : vector<16x128xf32>
    %222 = arith.addf %203, %221 : vector<16x128xf32>
    %223 = arith.addf %204, %210 : vector<1x128xf32>
    %c5_121 = arith.constant 5 : index
    %c0_122 = arith.constant 0 : index
    %c0_123 = arith.constant 0 : index
    %224 = vector.load %arg2[%c5_121, %c0_122, %c0_123] : memref<10x1x128xf32, #tpu.memory_space<vmem>>, vector<1x1x128xf32>
    %225 = vector.shape_cast %224 : vector<1x1x128xf32> to vector<1x128xf32>
    %cst_124 = arith.constant 0.000000e+00 : f32
    %226 = vector.broadcast %cst_124 : f32 to vector<1x128xf32>
    %227 = arith.cmpf one, %225, %226 : vector<1x128xf32>
    %228 = arith.extui %227 : vector<1x128xi1> to vector<1x128xi32>
    %229 = arith.sitofp %228 : vector<1x128xi32> to vector<1x128xf32>
    %230 = vector.extract_strided_slice %15 {offsets = [5, 0], sizes = [1, 1], strides = [1, 1]} : vector<10x1xf32> to vector<1x1xf32>
    %231 = vector.extract %230[0, 0] : f32 from vector<1x1xf32>
    %232 = vector.broadcast %231 : f32 to vector<1x128xf32>
    %233 = arith.mulf %232, %229 : vector<1x128xf32>
    %c5_125 = arith.constant 5 : index
    %c0_126 = arith.constant 0 : index
    %c0_127 = arith.constant 0 : index
    %234 = vector.load %arg1[%c5_125, %c0_126, %c0_127] : memref<10x16x128xf32, #tpu.memory_space<vmem>>, vector<1x16x128xf32>
    %235 = vector.shape_cast %234 : vector<1x16x128xf32> to vector<16x128xf32>
    %236 = vector.broadcast %126 : vector<1x128xf32> to vector<16x128xf32>
    %237 = arith.subf %235, %236 : vector<16x128xf32>
    %238 = math.exp %237 : vector<16x128xf32>
    %239 = vector.broadcast %233 : vector<1x128xf32> to vector<16x128xf32>
    %240 = arith.mulf %238, %239 : vector<16x128xf32>
    %241 = arith.addf %222, %240 : vector<16x128xf32>
    %242 = arith.addf %223, %229 : vector<1x128xf32>
    %c6_128 = arith.constant 6 : index
    %c0_129 = arith.constant 0 : index
    %c0_130 = arith.constant 0 : index
    %243 = vector.load %arg2[%c6_128, %c0_129, %c0_130] : memref<10x1x128xf32, #tpu.memory_space<vmem>>, vector<1x1x128xf32>
    %244 = vector.shape_cast %243 : vector<1x1x128xf32> to vector<1x128xf32>
    %cst_131 = arith.constant 0.000000e+00 : f32
    %245 = vector.broadcast %cst_131 : f32 to vector<1x128xf32>
    %246 = arith.cmpf one, %244, %245 : vector<1x128xf32>
    %247 = arith.extui %246 : vector<1x128xi1> to vector<1x128xi32>
    %248 = arith.sitofp %247 : vector<1x128xi32> to vector<1x128xf32>
    %249 = vector.extract_strided_slice %15 {offsets = [6, 0], sizes = [1, 1], strides = [1, 1]} : vector<10x1xf32> to vector<1x1xf32>
    %250 = vector.extract %249[0, 0] : f32 from vector<1x1xf32>
    %251 = vector.broadcast %250 : f32 to vector<1x128xf32>
    %252 = arith.mulf %251, %248 : vector<1x128xf32>
    %c6_132 = arith.constant 6 : index
    %c0_133 = arith.constant 0 : index
    %c0_134 = arith.constant 0 : index
    %253 = vector.load %arg1[%c6_132, %c0_133, %c0_134] : memref<10x16x128xf32, #tpu.memory_space<vmem>>, vector<1x16x128xf32>
    %254 = vector.shape_cast %253 : vector<1x16x128xf32> to vector<16x128xf32>
    %255 = vector.broadcast %126 : vector<1x128xf32> to vector<16x128xf32>
    %256 = arith.subf %254, %255 : vector<16x128xf32>
    %257 = math.exp %256 : vector<16x128xf32>
    %258 = vector.broadcast %252 : vector<1x128xf32> to vector<16x128xf32>
    %259 = arith.mulf %257, %258 : vector<16x128xf32>
    %260 = arith.addf %241, %259 : vector<16x128xf32>
    %261 = arith.addf %242, %248 : vector<1x128xf32>
    %c7_135 = arith.constant 7 : index
    %c0_136 = arith.constant 0 : index
    %c0_137 = arith.constant 0 : index
    %262 = vector.load %arg2[%c7_135, %c0_136, %c0_137] : memref<10x1x128xf32, #tpu.memory_space<vmem>>, vector<1x1x128xf32>
    %263 = vector.shape_cast %262 : vector<1x1x128xf32> to vector<1x128xf32>
    %cst_138 = arith.constant 0.000000e+00 : f32
    %264 = vector.broadcast %cst_138 : f32 to vector<1x128xf32>
    %265 = arith.cmpf one, %263, %264 : vector<1x128xf32>
    %266 = arith.extui %265 : vector<1x128xi1> to vector<1x128xi32>
    %267 = arith.sitofp %266 : vector<1x128xi32> to vector<1x128xf32>
    %268 = vector.extract_strided_slice %15 {offsets = [7, 0], sizes = [1, 1], strides = [1, 1]} : vector<10x1xf32> to vector<1x1xf32>
    %269 = vector.extract %268[0, 0] : f32 from vector<1x1xf32>
    %270 = vector.broadcast %269 : f32 to vector<1x128xf32>
    %271 = arith.mulf %270, %267 : vector<1x128xf32>
    %c7_139 = arith.constant 7 : index
    %c0_140 = arith.constant 0 : index
    %c0_141 = arith.constant 0 : index
    %272 = vector.load %arg1[%c7_139, %c0_140, %c0_141] : memref<10x16x128xf32, #tpu.memory_space<vmem>>, vector<1x16x128xf32>
    %273 = vector.shape_cast %272 : vector<1x16x128xf32> to vector<16x128xf32>
    %274 = vector.broadcast %126 : vector<1x128xf32> to vector<16x128xf32>
    %275 = arith.subf %273, %274 : vector<16x128xf32>
    %276 = math.exp %275 : vector<16x128xf32>
    %277 = vector.broadcast %271 : vector<1x128xf32> to vector<16x128xf32>
    %278 = arith.mulf %276, %277 : vector<16x128xf32>
    %279 = arith.addf %260, %278 : vector<16x128xf32>
    %280 = arith.addf %261, %267 : vector<1x128xf32>
    %c8_142 = arith.constant 8 : index
    %c0_143 = arith.constant 0 : index
    %c0_144 = arith.constant 0 : index
    %281 = vector.load %arg2[%c8_142, %c0_143, %c0_144] : memref<10x1x128xf32, #tpu.memory_space<vmem>>, vector<1x1x128xf32>
    %282 = vector.shape_cast %281 : vector<1x1x128xf32> to vector<1x128xf32>
    %cst_145 = arith.constant 0.000000e+00 : f32
    %283 = vector.broadcast %cst_145 : f32 to vector<1x128xf32>
    %284 = arith.cmpf one, %282, %283 : vector<1x128xf32>
    %285 = arith.extui %284 : vector<1x128xi1> to vector<1x128xi32>
    %286 = arith.sitofp %285 : vector<1x128xi32> to vector<1x128xf32>
    %287 = vector.extract_strided_slice %15 {offsets = [8, 0], sizes = [1, 1], strides = [1, 1]} : vector<10x1xf32> to vector<1x1xf32>
    %288 = vector.extract %287[0, 0] : f32 from vector<1x1xf32>
    %289 = vector.broadcast %288 : f32 to vector<1x128xf32>
    %290 = arith.mulf %289, %286 : vector<1x128xf32>
    %c8_146 = arith.constant 8 : index
    %c0_147 = arith.constant 0 : index
    %c0_148 = arith.constant 0 : index
    %291 = vector.load %arg1[%c8_146, %c0_147, %c0_148] : memref<10x16x128xf32, #tpu.memory_space<vmem>>, vector<1x16x128xf32>
    %292 = vector.shape_cast %291 : vector<1x16x128xf32> to vector<16x128xf32>
    %293 = vector.broadcast %126 : vector<1x128xf32> to vector<16x128xf32>
    %294 = arith.subf %292, %293 : vector<16x128xf32>
    %295 = math.exp %294 : vector<16x128xf32>
    %296 = vector.broadcast %290 : vector<1x128xf32> to vector<16x128xf32>
    %297 = arith.mulf %295, %296 : vector<16x128xf32>
    %298 = arith.addf %279, %297 : vector<16x128xf32>
    %299 = arith.addf %280, %286 : vector<1x128xf32>
    %c9_149 = arith.constant 9 : index
    %c0_150 = arith.constant 0 : index
    %c0_151 = arith.constant 0 : index
    %300 = vector.load %arg2[%c9_149, %c0_150, %c0_151] : memref<10x1x128xf32, #tpu.memory_space<vmem>>, vector<1x1x128xf32>
    %301 = vector.shape_cast %300 : vector<1x1x128xf32> to vector<1x128xf32>
    %cst_152 = arith.constant 0.000000e+00 : f32
    %302 = vector.broadcast %cst_152 : f32 to vector<1x128xf32>
    %303 = arith.cmpf one, %301, %302 : vector<1x128xf32>
    %304 = arith.extui %303 : vector<1x128xi1> to vector<1x128xi32>
    %305 = arith.sitofp %304 : vector<1x128xi32> to vector<1x128xf32>
    %306 = vector.extract_strided_slice %15 {offsets = [9, 0], sizes = [1, 1], strides = [1, 1]} : vector<10x1xf32> to vector<1x1xf32>
    %307 = vector.extract %306[0, 0] : f32 from vector<1x1xf32>
    %308 = vector.broadcast %307 : f32 to vector<1x128xf32>
    %309 = arith.mulf %308, %305 : vector<1x128xf32>
    %c9_153 = arith.constant 9 : index
    %c0_154 = arith.constant 0 : index
    %c0_155 = arith.constant 0 : index
    %310 = vector.load %arg1[%c9_153, %c0_154, %c0_155] : memref<10x16x128xf32, #tpu.memory_space<vmem>>, vector<1x16x128xf32>
    %311 = vector.shape_cast %310 : vector<1x16x128xf32> to vector<16x128xf32>
    %312 = vector.broadcast %126 : vector<1x128xf32> to vector<16x128xf32>
    %313 = arith.subf %311, %312 : vector<16x128xf32>
    %314 = math.exp %313 : vector<16x128xf32>
    %315 = vector.broadcast %309 : vector<1x128xf32> to vector<16x128xf32>
    %316 = arith.mulf %314, %315 : vector<16x128xf32>
    %317 = arith.addf %298, %316 : vector<16x128xf32>
    %318 = arith.addf %299, %305 : vector<1x128xf32>
    %319 = math.log %317 : vector<16x128xf32>
    %cst_156 = arith.constant dense<0.000000e+00> : vector<128xf32>
    %320 = vector.multi_reduction <add>, %319, %cst_156 [0] : vector<16x128xf32> to vector<128xf32>
    %321 = vector.shape_cast %320 : vector<128xf32> to vector<1x128xf32>
    %322 = math.log %318 : vector<1x128xf32>
    %323 = arith.subf %126, %322 : vector<1x128xf32>
    %cst_157 = arith.constant 1.600000e+01 : f32
    %324 = vector.broadcast %cst_157 : f32 to vector<1x128xf32>
    %325 = arith.mulf %324, %323 : vector<1x128xf32>
    %326 = arith.addf %321, %325 : vector<1x128xf32>
    %cst_158 = arith.constant 0.000000e+00 : f32
    %327 = vector.broadcast %cst_158 : f32 to vector<1x128xf32>
    %328 = arith.subf %327, %326 : vector<1x128xf32>
    %c0_159 = arith.constant 0 : index
    %c0_160 = arith.constant 0 : index
    %329 = vector.load %arg4[%c0_159, %c0_160] : memref<1x128xf32, #tpu.memory_space<vmem>>, vector<1x128xf32>
    tpu.vector_store %arg4[%c0_159, %c0_160], %328 {strides = array<i32>} : memref<1x128xf32, #tpu.memory_space<vmem>>, vector<1x128xf32>,
    return
  }
  func.func @transform_0(%arg0: i32) -> (i32, i32, i32) {
    %c0_i32 = arith.constant 0 : i32
    %c0_i32_0 = arith.constant 0 : i32
    %c0_i32_1 = arith.constant 0 : i32
    return %c0_i32, %c0_i32_0, %arg0 : i32, i32, i32
  }
  func.func @transform_1(%arg0: i32) -> (i32, i32, i32) {
    %c0_i32 = arith.constant 0 : i32
    %c0_i32_0 = arith.constant 0 : i32
    %c0_i32_1 = arith.constant 0 : i32
    return %c0_i32, %c0_i32_0, %arg0 : i32, i32, i32
  }
  func.func @transform_2(%arg0: i32) -> (i32, i32) {
    %c0_i32 = arith.constant 0 : i32
    %c0_i32_0 = arith.constant 0 : i32
    %c0_i32_1 = arith.constant 0 : i32
    return %c0_i32, %c0_i32_0 : i32, i32
  }
  func.func @transform_3(%arg0: i32) -> (i32, i32) {
    %c0_i32 = arith.constant 0 : i32
    %c0_i32_0 = arith.constant 0 : i32
    return %c0_i32, %arg0 : i32, i32
  }
}

</mosaic_0001>

<bundles_post_ra>
// kernel: tpu_custom_call.1
= control target key start
LH: loop header
LB: loop body
LE: loop exit
PB: predicated region body
PF: predicated region fallthrough
CT: control target
= control target key end

     0   :  { %8 = vsyncpa [#allocation3], 0  ;;  %s965_s0 = inlined_call_operand.hbm [shape: f32[10,16,128], index: 0, kind: input, shape index: {}]   ;;  %s966_s1 = inlined_call_operand.vmem [shape: f32[10,1,128], index: 1, kind: input, shape index: {}]   ;;  %s967_s2 = inlined_call_operand.vmem [shape: f32[10,1], index: 2, kind: input, shape index: {}]   ;;  %s968_s3 = inlined_call_operand.hbm [shape: f32[1,128], index: 3, kind: output, shape index: {}]  }
   0x1   :  { %9 = vsyncpa [#allocation4], 0  ;;  %s630_s12 = smov [#allocation2]   ;;  %s582_s16 = scalar_lea.hbm %s965_s0, 2560 }
   0x2   :  { %s15_s13 = sshll.u32 %s630_s12, 4  ;;  %p583_p0 = scmp.ne.s32.totalorder %s965_s0, %s582_s16  ;;  %s16_s13 = int_to_ptr.vmem [resolvable:$true] %s15_s13 }
   0x3   :  { %p586_p1 = scmp.lt.u32.totalorder %s582_s16, %s965_s0 }
   0x5   :  { %p588_p2 = pnand %p586_p1, %p583_p0 }
   0x7   :  { %591 = shalt.err (!%p588_p2)
}
   0x8   :  { %s592_s21 = scalar_lea.vmem %s16_s13, 2560  ;;  %p597_p4 = scmp.lt.s32.totalorder %s16_s13, %s16_s13 }
   0x9   :  { %p593_p3 = scmp.ne.s32.totalorder %s16_s13, %s592_s21  ;;  %p598_p5 = scmp.lt.s32.totalorder %s592_s21, %s592_s21 }
   0xb   :  { %p599_p6 = por %p598_p5, %p597_p4 }
   0xd   :  { %p600_p7 = pnand %p599_p6, %p593_p3 }
   0xf   :  { %603 = shalt.err (!%p600_p7)
}
  0x10   :  { %s631_s22 = smov 128   ;;  %s632_s23 = smov 8  }
  0x11   :  { %21 = dma.hbm_to_vmem [thread:$0]  %s965_s0, 2560, %s16_s13, [#allocation3], %s631_s22, %s631_s22, %s632_s23  }
  0x12   :  { %626 = dma.done.wait [#allocation3], 2560  }
  0x13   :  { %627 = vsyncadd [#allocation3], 4294964736  ;;  %vm31_vm0 = vcmask 7168   ;;  %vm33_vm1 = vcmask 1024   ;;  %v29_v0 = vld [vmem:[%s967_s2] sm:$0xff]  ;;  %v685_v30 = vld [vmem:[#allocation2 + $0x8] sm:$0xff] }
  0x14   :  { %v30_v1 = vld [vmem:[%s967_s2 + $0x8] sm:$0x3]  ;;  %v32_v2 = vsel %vm31_vm0, %v29_v0, -inf  ;;  %v683_v29 = vld [vmem:[#allocation2] sm:$0xff]  ;;  %v687_v31 = vld [vmem:[#allocation2 + $0x10] sm:$0xff]  ;;  %s634_s30 = smov [#allocation5]  }
  0x15   :  { %v34_v3 = vsel %vm33_vm1, %v30_v1, -inf  ;;  %v689_v32 = vld [vmem:[#allocation2 + $0x18] sm:$0xff]  ;;  %v70_v33 = vmax.f32 %v683_v29, %v685_v30  ;;  %v695_v35 = vld [vmem:[#allocation2 + $0x20] sm:$0xff]  ;;  %v697_v36 = vld [vmem:[#allocation2 + $0x28] sm:$0xff]  ;;  %s473_s4 = sshll.u32 %s634_s30, 4  ;;  %s474_s4 = int_to_ptr.vmem [resolvable:$true] %s473_s4 }
  0x16   :  { %v35_v4 = vmax.f32 %v32_v2, %v34_v3  ;;  %v83_v34 = vmax.f32 %v687_v31, %v689_v32  ;;  %v98_v39 = vmax.f32 %v695_v35, %v697_v36  ;;  %v701_v40 = vld [vmem:[#allocation2 + $0x30] sm:$0xff]  ;;  %v703_v41 = vld [vmem:[#allocation2 + $0x38] sm:$0xff]  ;;  %v707_v46 = vld [vmem:[#allocation2 + $0x40] sm:$0xff]  ;;  %s604_s5 = scalar_lea.vmem %s474_s4, 16  ;;  %p609_p9 = scmp.lt.s32.totalorder %s474_s4, %s474_s4 }
  0x17   :  { %v71_v37 = vrot.slane %v70_v33, 4  ;;  %v113_v45 = vmax.f32 %v701_v40, %v703_v41  ;;  %v709_v47 = vld [vmem:[#allocation2 + $0x48] sm:$0xff]  ;;  %v713_v53 = vld [vmem:[#allocation2 + $0x50] sm:$0xff]  ;;  %v715_v54 = vld [vmem:[#allocation2 + $0x58] sm:$0xff]  ;;  %p605_p8 = scmp.ne.s32.totalorder %s474_s4, %s604_s5 }
  0x18   :  { %36 = vmax.xlane.f32.xlu0 %v35_v4  ;;  %v84_v38 = vrot.slane %v83_v34, 4  ;;  %v99_v44 = vrot.slane %v98_v39, 4  ;;  %v128_v49 = vmax.f32 %v707_v46, %v709_v47  ;;  %v143_v60 = vmax.f32 %v713_v53, %v715_v54  ;;  %v719_v61 = vld [vmem:[#allocation2 + $0x60] sm:$0xff]  ;;  %v721_v62 = vld [vmem:[#allocation2 + $0x68] sm:$0xff] }
  0x19   :  { %v72_v42 = vmax.f32 %v70_v33, %v71_v37  ;;  %v114_v52 = vrot.slane %v113_v45, 4 }
  0x1a   :  { %v85_v43 = vmax.f32 %v83_v34, %v84_v38  ;;  %v100_v51 = vmax.f32 %v98_v39, %v99_v44  ;;  %v129_v56 = vrot.slane %v128_v49, 4  ;;  %v760_v38 = vld [vmem:[%s966_s1 + $0x3] sm:$0x1]  ;;  %v764_v44 = vld [vmem:[#allocation2 + $0x90] sm:$0xff] }
  0x1b   :  { %v73_v48 = vrot.slane %v72_v42, 2  ;;  %v115_v59 = vmax.f32 %v113_v45, %v114_v52  ;;  %v766_v45 = vld [vmem:[#allocation2 + $0x98] sm:$0xff]  ;;  %vm122_vm5 = vcmp.ne.f32.partialorder %v760_v38, 0.0 }
  0x1c   :  { %v86_v50 = vrot.slane %v85_v43, 2  ;;  %v101_v58 = vrot.slane %v100_v51, 2 }
  0x1d   :  { %v74_v55 = vmax.f32 %v72_v42, %v73_v48  ;;  %v116_v4 = vrot.slane %v115_v59, 2 }
  0x1e   :  { %v87_v57 = vmax.f32 %v85_v43, %v86_v50  ;;  %v102_v3 = vmax.f32 %v100_v51, %v101_v58  ;;  %v774_v51 = vld [vmem:[%s966_s1 + $0x4] sm:$0x1] }
  0x1f   :  { %v75_v63 = vrot.slane %v74_v55, 1  ;;  %vm137_vm6 = vcmp.ne.f32.partialorder %v774_v51, 0.0 }
  0x20   :  { %v88_v2 = vrot.slane %v87_v57, 1 }
  0xa5   :  { %v37_v5 = vpop.xlane.xlu0 %36 }
  0xa6   :  { %v38_v6 = vrot.slane %v37_v5, 4 }
  0xa8   :  { %v39_v7 = vmax.f32 %v37_v5, %v38_v6  ;;  %v144_v5 = vrot.slane %v143_v60, 4  ;;  %v158_v6 = vmax.f32 %v719_v61, %v721_v62 }
  0xaa   :  { %v40_v8 = vrot.slane %v39_v7, 2 }
  0xac   :  { %v41_v9 = vmax.f32 %v39_v7, %v40_v8  ;;  %v733_v7 = vld [vmem:[%s966_s1 + $0x1] sm:$0x1]  ;;  %v735_v8 = vld [vmem:[#allocation2 + $0x70] sm:$0xff] }
  0xad   :  { %vm92_vm3 = vcmp.ne.f32.partialorder %v733_v7, 0.0 }
  0xae   :  { %v42_v10 = vrot.slane %v41_v9, 1 }
  0xb0   :  { %v43_v11 = vmax.f32 %v41_v9, %v42_v10  ;;  %v737_v9 = vld [vmem:[#allocation2 + $0x78] sm:$0xff]  ;;  %v76_v10 = vmax.f32 %v74_v55, %v75_v63 }
  0xb2   :  { %501 = vpush %v43_v11 }
  0xe3   :  { %s502_s0 = spop %501 }
  0xe4   :  { %v45_v12 = vstv %s502_s0 }
  0xe5   :  { %v46_v13 = vsub.f32 %v29_v0, %v45_v12  ;;  %v47_v14 = vsub.f32 %v30_v1, %v45_v12  ;;  %v130_v0 = vmax.f32 %v128_v49, %v129_v56  ;;  %v726_v1 = vld [vmem:[%s966_s1] sm:$0x1]  ;;  %v89_v12 = vmax.f32 %v87_v57, %v88_v2 }
  0xe6   :  { %vm78_vm2 = vcmp.ne.f32.partialorder %v726_v1, 0.0  ;;  %v203_v57 = vmax.f32 %v764_v44, %v766_v45 }
  0xe7   :  { %v48_v15 = vmul.f32 1.442695, %v46_v13  ;;  %v50_v16 = vmul.f32 1.442695, %v47_v14  ;;  %v131_v11 = vrot.slane %v130_v0, 2  ;;  %v103_v13 = vrot.slane %v102_v3, 1 }
  0xe8   :  { %v117_v14 = vmax.f32 %v115_v59, %v116_v4 }
  0xe9   :  { %530 = vpow2.f32 %v48_v15  ;;  %v145_v15 = vmax.f32 %v143_v60, %v144_v5  ;;  %v785_v5 = vld [vmem:[%s966_s1 + $0x5] sm:$0x1] }
  0xea   :  { %532 = vpow2.f32 %v50_v16  ;;  %v159_v16 = vrot.slane %v158_v6, 4  ;;  %vm152_vm7 = vcmp.ne.f32.partialorder %v785_v5, 0.0 }
  0xeb   :  { %v146_v33 = vrot.slane %v145_v15, 2 }
  0xec   :  { %v160_v34 = vmax.f32 %v158_v6, %v159_v16 }
  0xed   :  { %v147_v50 = vmax.f32 %v145_v15, %v146_v33 }
  0xee   :  { %v161_v52 = vrot.slane %v160_v34, 2 }
  0xef   :  { %v148_v63 = vrot.slane %v147_v50, 1 }
  0xf0   :  { %v162_v2 = vmax.f32 %v160_v34, %v161_v52  ;;  %v794_v34 = vld [vmem:[%s966_s1 + $0x6] sm:$0x1] }
  0xf1   :  { %v149_v16 = vmax.f32 %v147_v50, %v148_v63  ;;  %vm167_vm8 = vcmp.ne.f32.partialorder %v794_v34, 0.0  ;;  %v802_v50 = vld [vmem:[%s966_s1 + $0x7] sm:$0x1] }
  0xf2   :  { %vm182_vm9 = vcmp.ne.f32.partialorder %v802_v50, 0.0 }
  0xf3   :  { %v675_v17 = vpop.eup %530 }
  0xf4   :  { %v677_v18 = vpop.eup %532  ;;  %v52_v19 = vsel %vm31_vm0, %v675_v17, 0.0 }
  0xf5   :  { %v53_v20 = vsel %vm33_vm1, %v677_v18, 0.0 }
  0xf6   :  { %v54_v21 = vadd.f32 %v53_v20, %v52_v19  ;;  %v173_v19 = vmax.f32 %v735_v8, %v737_v9 }
  0xf8   :  { %55 = vadd.xlane.f32.xlu0 %v54_v21  ;;  %v746_v21 = vld [vmem:[%s966_s1 + $0x2] sm:$0x1]  ;;  %v174_v37 = vrot.slane %v173_v19, 4 }
  0xf9   :  { %vm107_vm4 = vcmp.ne.f32.partialorder %v746_v21, 0.0 }
  0xfa   :  { %v175_v55 = vmax.f32 %v173_v19, %v174_v37 }
 0x185   :  { %v56_v22 = vpop.xlane.xlu0 %55 }
 0x186   :  { %v57_v23 = vrot.slane %v56_v22, 4 }
 0x188   :  { %v58_v24 = vadd.f32 %v57_v23, %v56_v22  ;;  %v79_v22 = vsel %vm78_vm2, %v76_v10, -inf  ;;  %v132_v23 = vmax.f32 %v130_v0, %v131_v11  ;;  %v204_v10 = vrot.slane %v203_v57, 4 }
 0x18a   :  { %v59_v25 = vrot.slane %v58_v24, 2  ;;  %v133_v43 = vrot.slane %v132_v23, 1 }
 0x18c   :  { %v60_v26 = vadd.f32 %v59_v25, %v58_v24  ;;  %v750_v24 = vld [vmem:[#allocation2 + $0x80] sm:$0xff]  ;;  %v752_v25 = vld [vmem:[#allocation2 + $0x88] sm:$0xff]  ;;  %v134_v59 = vmax.f32 %v132_v23, %v133_v43 }
 0x18d   :  { %v188_v39 = vmax.f32 %v750_v24, %v752_v25 }
 0x18e   :  { %v61_v27 = vrot.slane %v60_v26, 1 }
 0x18f   :  { %v189_v56 = vrot.slane %v188_v39, 4 }
 0x190   :  { %v62_v28 = vadd.f32 %v61_v27, %v60_v26  ;;  %v93_v26 = vsel %vm92_vm3, %v89_v12, -inf  ;;  %v104_v27 = vmax.f32 %v102_v3, %v103_v13  ;;  %v176_v3 = vrot.slane %v175_v55, 2 }
 0x191   :  { %v94_v42 = vmax.f32 %v79_v22, %v93_v26  ;;  %v190_v6 = vmax.f32 %v188_v39, %v189_v56  ;;  %v138_v12 = vsel %vm137_vm6, %v134_v59, -inf  ;;  %v153_v39 = vsel %vm152_vm7, %v149_v16, -inf  ;;  %v810_v59 = vld [vmem:[%s966_s1 + $0x8] sm:$0x1] }
 0x192   :  { %503 = vpush %v62_v28  ;;  %v118_v28 = vrot.slane %v117_v14, 1  ;;  %v108_v48 = vsel %vm107_vm4, %v104_v27, -inf  ;;  %v205_v27 = vmax.f32 %v203_v57, %v204_v10  ;;  %vm197_vm10 = vcmp.ne.f32.partialorder %v810_v59, 0.0 }
 0x193   :  { %v109_v58 = vmax.f32 %v94_v42, %v108_v48  ;;  %v191_v26 = vrot.slane %v190_v6, 2 }
 0x194   :  { %v119_v49 = vmax.f32 %v117_v14, %v118_v28 }
 0x195   :  { %v192_v48 = vmax.f32 %v190_v6, %v191_v26 }
 0x196   :  { %v123_v60 = vsel %vm122_vm5, %v119_v49, -inf  ;;  %v206_v49 = vrot.slane %v205_v27, 2 }
 0x197   :  { %v124_v11 = vmax.f32 %v109_v58, %v123_v60  ;;  %v193_v57 = vrot.slane %v192_v48, 1 }
 0x198   :  { %v207_v58 = vmax.f32 %v205_v27, %v206_v49 }
 0x199   :  { %v139_v37 = vmax.f32 %v124_v11, %v138_v12 }
 0x19b   :  { %v154_v52 = vmax.f32 %v139_v37, %v153_v39  ;;  %v633_v39 = vmov 0.0  }
 0x19c   :  { %v494_v21 = vsel %vm122_vm5, 1.0, %v633_v39 }
 0x1c3   :  { %s504_s6 = spop %503 }
 0x1c4   :  { %v64_v20 = vstv %s504_s6  ;;  %s608_s6 = scalar_lea.vmem %s474_s4, 32 }
 0x1c5   :  { %534 = vrcp.f32 %v64_v20  ;;  %v177_v20 = vmax.f32 %v175_v55, %v176_v3  ;;  %v818_v3 = vld [vmem:[%s966_s1 + $0x9] sm:$0x1]  ;;  %p610_p10 = scmp.lt.s32.totalorder %s608_s6, %s604_s5 }
 0x1c6   :  { %vm212_vm11 = vcmp.ne.f32.partialorder %v818_v3, 0.0 }
 0x1c7   :  { %p611_p11 = por %p610_p10, %p609_p9 }
 0x1c9   :  { %p612_p12 = pnand %p611_p11, %p605_p8 }
 0x1cf   :  { %v535_v0 = vpop.eup %534 }
 0x1d0   :  { %v66_v4 = vmul.f32 %v535_v0, %v675_v17  ;;  %v163_v17 = vrot.slane %v162_v2, 1  ;;  %v67_v23 = vmul.f32 %v535_v0, %v677_v18  ;;  %v178_v18 = vrot.slane %v177_v20, 1 }
 0x1d1   :  { %v194_v0 = vmax.f32 %v192_v48, %v193_v57 }
 0x1d2   :  { %505 = vpush %v66_v4  ;;  %v245_v13 = vrot.slane %v66_v4, 1  ;;  %v268_v14 = vrot.slane %v66_v4, 2  ;;  %v291_v15 = vrot.slane %v66_v4, 3  ;;  %v314_v19 = vrot.slane %v66_v4, 4 }
 0x1d3   :  { %v337_v22 = vrot.slane %v66_v4, 5  ;;  %v360_v28 = vrot.slane %v66_v4, 6  ;;  %v383_v33 = vrot.slane %v66_v4, 7  ;;  %v164_v42 = vmax.f32 %v162_v2, %v163_v17 }
 0x1d4   :  { %507 = vpush %v245_v13  ;;  %v428_v43 = vrot.slane %v67_v23, 1  ;;  %v179_v56 = vmax.f32 %v177_v20, %v178_v18  ;;  %v208_v2 = vrot.slane %v207_v58, 1  ;;  %v221_v4 = vlaneseq }
 0x1d5   :  { %509 = vpush %v268_v14  ;;  %v168_v55 = vsel %vm167_vm8, %v164_v42, -inf  ;;  %v198_v10 = vsel %vm197_vm10, %v194_v0, -inf }
 0x1d6   :  { %511 = vpush %v291_v15  ;;  %v169_v60 = vmax.f32 %v154_v52, %v168_v55  ;;  %v183_v63 = vsel %vm182_vm9, %v179_v56, -inf  ;;  %v209_v11 = vmax.f32 %v207_v58, %v208_v2  ;;  %v222_v12 = vshrl.u32 %v221_v4, 7 }
 0x1d7   :  { %513 = vpush %v314_v19  ;;  %v879_v56 = vsel %vm137_vm6, 1.0, %v633_v39 }
 0x1d8   :  { %515 = vpush %v337_v22  ;;  %v184_v6 = vmax.f32 %v169_v60, %v183_v63  ;;  %v213_v14 = vsel %vm212_vm11, %v209_v11, -inf  ;;  %v825_v15 = vsub.s32 0, %v222_v12  ;;  %v893_v60 = vsel %vm167_vm8, 1.0, %v633_v39 }
 0x1d9   :  { %517 = vpush %v360_v28 }
 0x1da   :  { %519 = vpush %v383_v33  ;;  %v199_v13 = vmax.f32 %v184_v6, %v198_v10 }
 0x1db   :  { %521 = vpush %v67_v23 }
 0x1dc   :  { %523 = vpush %v428_v43  ;;  %v827_v16 = vmax.f32 %v199_v13, %v213_v14 }
 0x1de   :  { %v831_v19 = vrot.slane %v827_v16, %v825_v15 }
 0x1e0   :  { %v432_v17 = vsub.f32 %v764_v44, %v831_v19  ;;  %v433_v20 = vsub.f32 %v766_v45, %v831_v19  ;;  %v226_v22 = vsub.f32 %v683_v29, %v831_v19  ;;  %v227_v23 = vsub.f32 %v685_v30, %v831_v19 }
 0x1e1   :  { %v249_v27 = vsub.f32 %v687_v31, %v831_v19  ;;  %v250_v33 = vsub.f32 %v689_v32, %v831_v19  ;;  %v272_v44 = vsub.f32 %v695_v35, %v831_v19  ;;  %v491_v29 = vsel %vm78_vm2, 1.0, %v633_v39 }
 0x1e2   :  { %v434_v26 = vmul.f32 1.442695, %v432_v17  ;;  %v436_v28 = vmul.f32 1.442695, %v433_v20  ;;  %v228_v37 = vmul.f32 1.442695, %v226_v22  ;;  %v273_v31 = vsub.f32 %v697_v36, %v831_v19 }
 0x1e3   :  { %v853_v30 = vsel %vm92_vm3, 1.0, %v633_v39  ;;  %v230_v45 = vmul.f32 1.442695, %v227_v23  ;;  %v251_v42 = vmul.f32 1.442695, %v249_v27  ;;  %v295_v35 = vsub.f32 %v701_v40, %v831_v19 }
 0x1e4   :  { %v265_v32 = vadd.f32 %v853_v30, %v491_v29  ;;  %536 = vpow2.f32 %v434_v26  ;;  %v253_v43 = vmul.f32 1.442695, %v250_v33  ;;  %v296_v1 = vsub.f32 %v703_v41, %v831_v19 }
 0x1e5   :  { %538 = vpow2.f32 %v436_v28  ;;  %v274_v7 = vmul.f32 1.442695, %v272_v44  ;;  %v318_v18 = vsub.f32 %v707_v46, %v831_v19  ;;  %v493_v36 = vsel %vm107_vm4, 1.0, %v633_v39 }
 0x1e6   :  { %540 = vpow2.f32 %v228_v37  ;;  %v276_v48 = vmul.f32 1.442695, %v273_v31  ;;  %v319_v49 = vsub.f32 %v709_v47, %v831_v19  ;;  %v288_v40 = vadd.f32 %v493_v36, %v265_v32 }
 0x1e7   :  { %542 = vpow2.f32 %v230_v45  ;;  %v297_v52 = vmul.f32 1.442695, %v295_v35  ;;  %v341_v41 = vsub.f32 %v713_v53, %v831_v19  ;;  %v299_v55 = vmul.f32 1.442695, %v296_v1 }
 0x1e8   :  { %544 = vpow2.f32 %v251_v42  ;;  %v342_v46 = vsub.f32 %v715_v54, %v831_v19  ;;  %v320_v47 = vmul.f32 1.442695, %v318_v18  ;;  %v884_v53 = vsel %vm152_vm7, 1.0, %v633_v39 }
 0x1e9   :  { %546 = vpow2.f32 %v253_v43  ;;  %v322_v57 = vmul.f32 1.442695, %v319_v49  ;;  %v364_v54 = vsub.f32 %v719_v61, %v831_v19  ;;  %v311_v58 = vadd.f32 %v494_v21, %v288_v40 }
 0x1ea   :  { %548 = vpow2.f32 %v274_v7  ;;  %v343_v38 = vmul.f32 1.442695, %v341_v41  ;;  %v365_v51 = vsub.f32 %v721_v62, %v831_v19  ;;  %v345_v5 = vmul.f32 1.442695, %v342_v46 }
 0x1eb   :  { %550 = vpow2.f32 %v276_v48  ;;  %v387_v63 = vsub.f32 %v735_v8, %v831_v19  ;;  %v902_v61 = vsel %vm182_vm9, 1.0, %v633_v39  ;;  %v907_v62 = vsel %vm197_vm10, 1.0, %v633_v39 }
 0x1ec   :  { %552 = vpow2.f32 %v297_v52  ;;  %v388_v34 = vsub.f32 %v737_v9, %v831_v19  ;;  %v366_v4 = vmul.f32 1.442695, %v364_v54  ;;  %v409_v6 = vsub.f32 %v750_v24, %v831_v19 }
 0x1ed   :  { %554 = vpow2.f32 %v299_v55  ;;  %v916_v11 = vadd.f32 %v879_v56, %v311_v58  ;;  %v368_v59 = vmul.f32 1.442695, %v365_v51  ;;  %v389_v9 = vmul.f32 1.442695, %v387_v63 }
 0x1ee   :  { %v897_v0 = vpop.eup %536  ;;  %556 = vpow2.f32 %v320_v47  ;;  %v410_v14 = vsub.f32 %v752_v25, %v831_v19  ;;  %v391_v23 = vmul.f32 1.442695, %v388_v34  ;;  %v411_v33 = vmul.f32 1.442695, %v409_v6 }
 0x1ef   :  { %v911_v2 = vpop.eup %538  ;;  %558 = vpow2.f32 %v322_v57  ;;  %v357_v63 = vadd.f32 %v884_v53, %v916_v11 }
 0x1f0   :  { %v541_v50 = vpop.eup %540  ;;  %560 = vpow2.f32 %v343_v38  ;;  %v413_v31 = vmul.f32 1.442695, %v410_v14 }
 0x1f1   :  { %v543_v12 = vpop.eup %542  ;;  %562 = vpow2.f32 %v345_v5 }
 0x1f2   :  { %v545_v17 = vpop.eup %544  ;;  %564 = vpow2.f32 %v366_v4 }
 0x1f3   :  { %v547_v26 = vpop.eup %546  ;;  %566 = vpow2.f32 %v368_v59 }
 0x1f4   :  { %v549_v37 = vpop.eup %548  ;;  %568 = vpow2.f32 %v389_v9 }
 0x1f5   :  { %v551_v25 = vpop.eup %550  ;;  %570 = vpow2.f32 %v391_v23 }
 0x1f6   :  { %v553_v32 = vpop.eup %552  ;;  %572 = vpow2.f32 %v411_v33 }
 0x1f7   :  { %v555_v7 = vpop.eup %554  ;;  %574 = vpow2.f32 %v413_v31 }
 0x1f8   :  { %v557_v49 = vpop.eup %556 }
 0x1f9   :  { %v559_v55 = vpop.eup %558 }
 0x1fa   :  { %v561_v47 = vpop.eup %560 }
 0x1fb   :  { %v563_v51 = vpop.eup %562 }
 0x203   :  { %s506_s1 = spop %505 }
 0x204   :  { %v218_v8 = vstv %s506_s1 }
 0x205   :  { %v219_v10 = vmul.f32 %v491_v29, %v218_v8  ;;  %s508_s23 = spop %507 }
 0x206   :  { %v247_v13 = vstv %s508_s23  ;;  %s510_s24 = spop %509 }
 0x207   :  { %v236_v20 = vrot.slane %v219_v10, %v825_v15  ;;  %v248_v24 = vmul.f32 %v853_v30, %v247_v13  ;;  %v270_v22 = vstv %s510_s24  ;;  %s512_s25 = spop %511 }
 0x208   :  { %v271_v27 = vmul.f32 %v493_v36, %v270_v22  ;;  %v293_v28 = vstv %s512_s25  ;;  %s514_s26 = spop %513 }
 0x209   :  { %v259_v44 = vrot.slane %v248_v24, %v825_v15  ;;  %v294_v29 = vmul.f32 %v494_v21, %v293_v28  ;;  %v316_v45 = vstv %s514_s26  ;;  %s516_s27 = spop %515  ;;  %v238_v30 = vmul.f32 %v541_v50, %v236_v20  ;;  %v565_v50 = vpop.eup %564 }
 0x20a   :  { %v339_v19 = vstv %s516_s27  ;;  %s518_s28 = spop %517  ;;  %v282_v42 = vrot.slane %v271_v27, %v825_v15  ;;  %v317_v35 = vmul.f32 %v879_v56, %v316_v45  ;;  %v239_v36 = vmul.f32 %v543_v12, %v236_v20  ;;  %v567_v12 = vpop.eup %566 }
 0x20b   :  { %v362_v43 = vstv %s518_s28  ;;  %s520_s29 = spop %519  ;;  %v261_v1 = vmul.f32 %v545_v17, %v259_v44  ;;  %v340_v18 = vmul.f32 %v884_v53, %v339_v19  ;;  %v262_v48 = vmul.f32 %v547_v26, %v259_v44  ;;  %v569_v20 = vpop.eup %568 }
 0x20c   :  { %s926_s0 = spop %521  ;;  %v305_v40 = vrot.slane %v294_v29, %v825_v15  ;;  %v385_v52 = vstv %s520_s29  ;;  %v363_v46 = vmul.f32 %v893_v60, %v362_v43  ;;  %v500_v21 = vsel %vm212_vm11, 1.0, %v633_v39  ;;  %v571_v28 = vpop.eup %570 }
 0x20d   :  { %s929_s2 = spop %523  ;;  %v263_v41 = vadd.f32 %v261_v1, %v238_v30  ;;  %v264_v56 = vadd.f32 %v262_v48, %v239_v36  ;;  %v328_v57 = vrot.slane %v317_v35, %v825_v15  ;;  %v407_v54 = vstv %s926_s0 }
 0x20e   :  { %v284_v58 = vmul.f32 %v549_v37, %v282_v42  ;;  %v285_v38 = vmul.f32 %v551_v25, %v282_v42  ;;  %v351_v5 = vrot.slane %v340_v18, %v825_v15  ;;  %v386_v34 = vmul.f32 %v902_v61, %v385_v52  ;;  %v573_v37 = vpop.eup %572 }
 0x20f   :  { %v430_v8 = vstv %s929_s2  ;;  %v307_v39 = vmul.f32 %v553_v32, %v305_v40  ;;  %v308_v6 = vmul.f32 %v555_v7, %v305_v40  ;;  %v374_v10 = vrot.slane %v363_v46, %v825_v15  ;;  %v575_v19 = vpop.eup %574 }
 0x210   :  { %v286_v4 = vadd.f32 %v284_v58, %v263_v41  ;;  %v287_v3 = vadd.f32 %v285_v38, %v264_v56  ;;  %v408_v59 = vmul.f32 %v907_v62, %v407_v54  ;;  %v330_v14 = vmul.f32 %v557_v49, %v328_v57 }
 0x211   :  { %v331_v17 = vmul.f32 %v559_v55, %v328_v57  ;;  %v380_v53 = vadd.f32 %v893_v60, %v357_v63  ;;  %v397_v11 = vrot.slane %v386_v34, %v825_v15  ;;  %v431_v24 = vmul.f32 %v500_v21, %v430_v8 }
 0x212   :  { %v309_v13 = vadd.f32 %v307_v39, %v286_v4  ;;  %v310_v9 = vadd.f32 %v308_v6, %v287_v3  ;;  %v353_v26 = vmul.f32 %v561_v47, %v351_v5  ;;  %v354_v27 = vmul.f32 %v563_v51, %v351_v5 }
 0x213   :  { %v419_v33 = vrot.slane %v408_v59, %v825_v15  ;;  %v376_v45 = vmul.f32 %v565_v50, %v374_v10  ;;  %v377_v25 = vmul.f32 %v567_v12, %v374_v10  ;;  %v403_v30 = vadd.f32 %v902_v61, %v380_v53 }
 0x214   :  { %v332_v22 = vadd.f32 %v330_v14, %v309_v13  ;;  %v333_v23 = vadd.f32 %v331_v17, %v310_v9  ;;  %v442_v60 = vrot.slane %v431_v24, %v825_v15  ;;  %v399_v42 = vmul.f32 %v569_v20, %v397_v11 }
 0x215   :  { %v400_v35 = vmul.f32 %v571_v28, %v397_v11  ;;  %v421_v7 = vmul.f32 %v573_v37, %v419_v33  ;;  %v422_v18 = vmul.f32 %v575_v19, %v419_v33  ;;  %v425_v36 = vadd.f32 %v907_v62, %v403_v30 }
 0x216   :  { %v355_v44 = vadd.f32 %v353_v26, %v332_v22  ;;  %v356_v29 = vadd.f32 %v354_v27, %v333_v23  ;;  %v444_v48 = vmul.f32 %v897_v0, %v442_v60  ;;  %v445_v49 = vmul.f32 %v911_v2, %v442_v60 }
 0x217   :  { %v448_v55 = vadd.f32 %v500_v21, %v425_v36 }
 0x218   :  { %v378_v31 = vadd.f32 %v376_v45, %v355_v44  ;;  %v379_v32 = vadd.f32 %v377_v25, %v356_v29 }
 0x21a   :  { %v401_v43 = vadd.f32 %v399_v42, %v378_v31  ;;  %v402_v1 = vadd.f32 %v400_v35, %v379_v32 }
 0x21c   :  { %v423_v40 = vadd.f32 %v421_v7, %v401_v43  ;;  %v424_v52 = vadd.f32 %v422_v18, %v402_v1 }
 0x21e   :  { %v446_v41 = vadd.f32 %v444_v48, %v423_v40  ;;  %v447_v61 = vadd.f32 %v445_v49, %v424_v52 }
 0x220   :  { %576 = vlog2.f32 %v446_v41 }
 0x221   :  { %578 = vlog2.f32 %v447_v61 }
 0x222   :  { %580 = vlog2.f32 %v448_v55 }
 0x22a   :  { %v577_v15 = vpop.eup %576 }
 0x22b   :  { %v579_v46 = vpop.eup %578  ;;  %v450_v56 = vmul.f32 0.6931472, %v577_v15 }
 0x22c   :  { %v452_v47 = vmul.f32 0.6931472, %v579_v46  ;;  %v581_v57 = vpop.eup %580 }
 0x22d   :  { %v461_v58 = vmul.f32 0.6931472, %v581_v57 }
 0x22e   :  { %v453_v54 = vadd.f32 %v452_v47, %v450_v56 }
 0x22f   :  { %v462_v2 = vsub.f32 %v827_v16, %v461_v58 }
 0x230   :  { %v454_v62 = vrot.slane %v453_v54, 4 }
 0x231   :  { %v463_v63 = vmul.f32 16.0, %v462_v2 }
 0x232   :  { %v455_v38 = vadd.f32 %v454_v62, %v453_v54 }
 0x234   :  { %v456_v0 = vrot.slane %v455_v38, 2 }
 0x236   :  { %v457_v51 = vadd.f32 %v456_v0, %v455_v38 }
 0x238   :  { %v458_v5 = vrot.slane %v457_v51, 1 }
 0x23a   :  { %v459_v34 = vadd.f32 %v458_v5, %v457_v51 }
 0x23c   :  { %v464_v21 = vadd.f32 %v463_v63, %v459_v34 }
 0x23e   :  { %v465_v8 = vsub.f32 0.0, %v464_v21 }
 0x240   :  { %466 = vst [vmem:[#allocation5] sm:$0x1] %v465_v8 }
 0x241   :  { %615 = shalt.err (!%p612_p12)
}
 0x242   :  { %s616_s9 = scalar_lea.hbm %s968_s3, 16 }
 0x243   :  { %p617_p13 = scmp.ne.s32.totalorder %s968_s3, %s616_s9  ;;  %p620_p0 = scmp.lt.u32.totalorder %s616_s9, %s968_s3 }
 0x245   :  { %p622_p1 = pnand %p620_p0, %p617_p13 }
 0x247   :  { %625 = shalt.err (!%p622_p1)
}
 0x248   :  { %476 = dma.vmem_to_hbm [thread:$0]  %s474_s4, 16, %s968_s3, [#allocation4]  }
 0x249   :  { %628 = dma.done.wait [#allocation4], 16  }
 0x24a   :  { %629 = vsyncadd [#allocation4], 4294967280 }
 0x24b   :  { %480 = vsyncpa [#allocation3], 1 }
 0x24c   :  { %481 = vsyncpa [#allocation4], 1 }

</bundles_post_ra>
